<compile_context>
chip_gen: v5e
topology: v5e:2x2
jax: 0.10.0
libtpu: 0.0.40
codegen_flags: <defaults>
</compile_context>

<pallas_src>
import jax
import jax.numpy as jnp
import numpy as np
from jax.experimental import pallas as pl
from jax.experimental.pallas import tpu as pltpu


# ----------------------------- Pallas kernel --------------------------------
def _lstm_dense_kernel(seq_len_ref,   # (B, 1)    int32  valid lengths
                       seq_ref,       # (B*T, D)  f32    batch-major, flattened
                       meta_ref,      # (B, M)    f32    metadata
                       wih_ref,       # (D, 4H)   f32    W_ih^T
                       whh_ref,       # (H, 4H)   f32    W_hh^T
                       b_ref,         # (1, 4H)   f32    b_ih + b_hh
                       w1h_ref,       # (H, L0)   f32    linear1 weight (h part)^T
                       w1m_ref,       # (M, L0)   f32    linear1 weight (meta part)^T
                       b1_ref,        # (1, L0)   f32
                       w2_ref,        # (L0, L1)  f32    other_linears[0]^T
                       b2_ref,        # (1, L1)   f32
                       out_ref):      # (B, L1+M) f32
    B = seq_len_ref.shape[0]
    BT = seq_ref.shape[0]
    T = BT // B
    H, G = whh_ref.shape                     # G = 4H

    # ---- hoisted input projection: one (B*T,D)x(D,4H) matmul + bias, off the
    # ---- serial critical path. Reshape to (B,T,4H) is layout-identical
    # ---- (row-major, minor dims preserved), so per-step slicing is free-ish
    # ---- and independent of the recurrence carries (scheduler hoists it). ---
    gx = (jnp.dot(seq_ref[...], wih_ref[...],
                  preferred_element_type=jnp.float32) + b_ref[...]).reshape(B, T, G)

    seq_len = seq_len_ref[...]               # (B, 1) int32, loaded once
    whh = whh_ref[...]                       # (H, 4H), loaded once

    # ---- recurrence: h, c carried as values; T is small & static so a Python
    # ---- loop == full unroll and every slice / compare index is static. ------
    h = jnp.zeros((B, H), jnp.float32)
    c = jnp.zeros((B, H), jnp.float32)
    for t in range(T):
        gx_t = gx[:, t, :]                                   # (B, 4H) static slice
        gates = jnp.dot(h, whh, preferred_element_type=jnp.float32) + gx_t
        # one full-vreg sigmoid + one full-vreg tanh (EUP), then slice gates
        sig = jax.nn.sigmoid(gates)                          # (B, 4H)
        tnh = jnp.tanh(gates)                                # (B, 4H)
        i_g = sig[:, 0 * H:1 * H]
        f_g = sig[:, 1 * H:2 * H]
        g_g = tnh[:, 2 * H:3 * H]
        o_g = sig[:, 3 * H:4 * H]
        c_new = f_g * c + i_g * g_g
        h_new = o_g * jnp.tanh(c_new)
        # pack_padded semantics: freeze state at/after the last valid step.
        valid = seq_len > t                                  # (B, 1) bool
        h = jnp.where(valid, h_new, h)
        c = jnp.where(valid, c_new, c)

    # ---- dense head: linear1 on concat([h, metadata]) as a split matmul -----
    meta = meta_ref[...]
    hidden = (jnp.dot(h, w1h_ref[...], preferred_element_type=jnp.float32)
              + jnp.dot(meta, w1m_ref[...], preferred_element_type=jnp.float32)
              + b1_ref[...])
    hidden = jnp.maximum(hidden, 0.0)                        # relu

    # other_linears[0] (dropout p=0 / eval -> no-op), relu after (per module)
    hidden = jnp.dot(hidden, w2_ref[...],
                     preferred_element_type=jnp.float32) + b2_ref[...]
    hidden = jnp.maximum(hidden, 0.0)

    # torch.cat([hidden, metadata], 1): single store of the concatenated row
    out_ref[...] = jnp.concatenate([hidden, meta], axis=1).astype(out_ref.dtype)


# ----------------------------- one-time weight prep ---------------------------
def prepare_params(raw_params):
    """Host-side prep done ONCE (kept off the per-call path, per perf review)."""
    (w_ih, w_hh, b_ih, b_hh, w1, b1, w2, b2) = raw_params
    H = w_hh.shape[1]
    L0 = w1.shape[0]
    L1 = w2.shape[0]
    return (jnp.asarray(w_ih.T, jnp.float32),                        # (D, 4H)
            jnp.asarray(w_hh.T, jnp.float32),                        # (H, 4H)
            jnp.asarray((b_ih + b_hh).reshape(1, 4 * H), jnp.float32),
            jnp.asarray(w1[:, :H].T, jnp.float32),                   # (H, L0)
            jnp.asarray(w1[:, H:].T, jnp.float32),                   # (M, L0)
            jnp.asarray(b1.reshape(1, L0), jnp.float32),
            jnp.asarray(w2.T, jnp.float32),                          # (L0, L1)
            jnp.asarray(b2.reshape(1, L1), jnp.float32))


# ------------------------------- wrapper -------------------------------------
@jax.jit
def my_lstm_output_hidden(seq_len, seq_btd, metadata, prepped):
    """seq_len: (B,) int32; seq_btd: (B, T, D) f32 (batch_first, like PyTorch);
    metadata: (B, M) f32; prepped: output of prepare_params.
    Returns (B, L1 + M) f32."""
    (wih_t, whh_t, b_lstm, w1h_t, w1m_t, b1_2d, w2_t, b2_2d) = prepped
    B, T, D = seq_btd.shape
    M = metadata.shape[1]
    L1 = w2_t.shape[1]

    # batch-major flatten: a free view (no transpose, no data movement)
    seq_2d = seq_btd.astype(jnp.float32).reshape(B * T, D)
    seq_len2d = seq_len.astype(jnp.int32).reshape(B, 1)

    inputs = (seq_len2d, seq_2d, metadata.astype(jnp.float32),
              wih_t, whh_t, b_lstm, w1h_t, w1m_t, b1_2d, w2_t, b2_2d)

    vmem_spec = pl.BlockSpec(memory_space=pltpu.MemorySpace.VMEM)
    return pl.pallas_call(
        _lstm_dense_kernel,
        out_shape=jax.ShapeDtypeStruct((B, L1 + M), jnp.float32),
        in_specs=[vmem_spec] * len(inputs),
        out_specs=vmem_spec,
    )(*inputs)


# --------------------------- pure-JAX reference -------------------------------
def reference(seq_len, seq_btd, metadata, params):
    (w_ih, w_hh, b_ih, b_hh, w1, b1, w2, b2) = params
    B, T, D = seq_btd.shape
    H = w_hh.shape[1]
    h = jnp.zeros((B, H), jnp.float32)
    c = jnp.zeros((B, H), jnp.float32)
    for t in range(T):
        x_t = seq_btd[:, t, :]
        gates = x_t @ w_ih.T + h @ w_hh.T + b_ih + b_hh
        i_g = jax.nn.sigmoid(gates[:, 0 * H:1 * H])
        f_g = jax.nn.sigmoid(gates[:, 1 * H:2 * H])
        g_g = jnp.tanh(gates[:, 2 * H:3 * H])
        o_g = jax.nn.sigmoid(gates[:, 3 * H:4 * H])
        c_new = f_g * c + i_g * g_g
        h_new = o_g * jnp.tanh(c_new)
        valid = (t < seq_len)[:, None]
        h = jnp.where(valid, h_new, h)
        c = jnp.where(valid, c_new, c)
    dense_in = jnp.concatenate([h, metadata], axis=1)
    hidden = jnp.maximum(dense_in @ w1.T + b1, 0.0)
    hidden = jnp.maximum(hidden @ w2.T + b2, 0.0)
    return jnp.concatenate([hidden, metadata], axis=1)


# --------------------------------- main ---------------------------------------
if __name__ == "__main__":
    B, T, D, H, M = 8, 8, 32, 32, 8          # batch, seq len, vocab, lstm hidden, metadata
    L0, L1 = 32, 16                           # linear_layer_sizes = [32, 16]

    key = jax.random.PRNGKey(0)
    keys = jax.random.split(key, 12)

    # deterministic parameter init (shapes follow nn.LSTM / nn.Linear)
    s = 0.1
    w_ih = s * jax.random.normal(keys[0], (4 * H, D), jnp.float32)
    w_hh = s * jax.random.normal(keys[1], (4 * H, H), jnp.float32)
    b_ih = s * jax.random.normal(keys[2], (4 * H,), jnp.float32)
    b_hh = s * jax.random.normal(keys[3], (4 * H,), jnp.float32)
    w1 = s * jax.random.normal(keys[4], (L0, H + M), jnp.float32)   # linear1
    b1 = s * jax.random.normal(keys[5], (L0,), jnp.float32)
    w2 = s * jax.random.normal(keys[6], (L1, L0), jnp.float32)      # other_linears[0]
    b2 = s * jax.random.normal(keys[7], (L1,), jnp.float32)
    params = (w_ih, w_hh, b_ih, b_hh, w1, b1, w2, b2)
    prepped = prepare_params(params)          # one-time, off the call path

    # inputs: lengths sorted descending (as the module expects), padded seq
    # (padding positions left as random garbage on purpose: jnp.where masking
    # reproduces pack_padded semantics regardless of padding contents), metadata
    seq_len = jnp.array([8, 8, 7, 6, 5, 4, 3, 2], jnp.int32)
    seq = jax.random.normal(keys[8], (B, T, D), jnp.float32)
    metadata = jax.random.normal(keys[9], (B, M), jnp.float32)

    out = my_lstm_output_hidden(seq_len, seq, metadata, prepped)
    out = jax.block_until_ready(out)

    ref = reference(seq_len, seq, metadata, params)
    np.testing.assert_allclose(np.asarray(out), np.asarray(ref), rtol=1e-5, atol=1e-5)
    print("KERNEL_OK")
</pallas_src>

<mosaic_0001>
module attributes {stable_mosaic.version = 11 : i64} {
  func.func @_lstm_dense_kernel(%arg0: memref<8x1xi32, #tpu.memory_space<vmem>>, %arg1: memref<64x32xf32, #tpu.memory_space<vmem>>, %arg2: memref<8x8xf32, #tpu.memory_space<vmem>>, %arg3: memref<32x128xf32, #tpu.memory_space<vmem>>, %arg4: memref<32x128xf32, #tpu.memory_space<vmem>>, %arg5: memref<1x128xf32, #tpu.memory_space<vmem>>, %arg6: memref<32x32xf32, #tpu.memory_space<vmem>>, %arg7: memref<8x32xf32, #tpu.memory_space<vmem>>, %arg8: memref<1x32xf32, #tpu.memory_space<vmem>>, %arg9: memref<32x16xf32, #tpu.memory_space<vmem>>, %arg10: memref<1x16xf32, #tpu.memory_space<vmem>>, %arg11: memref<8x24xf32, #tpu.memory_space<vmem>>) attributes {dimension_semantics = [], scalar_prefetch = 0 : i64, scratch_operands = 0 : i64, tpu.core_type = #tpu.core_type<tc>} {
    %c0 = arith.constant 0 : index
    %c0_0 = arith.constant 0 : index
    %0 = vector.load %arg1[%c0, %c0_0] : memref<64x32xf32, #tpu.memory_space<vmem>>, vector<64x32xf32>
    %c0_1 = arith.constant 0 : index
    %c0_2 = arith.constant 0 : index
    %1 = vector.load %arg3[%c0_1, %c0_2] : memref<32x128xf32, #tpu.memory_space<vmem>>, vector<32x128xf32>
    %cst = arith.constant dense<0.000000e+00> : vector<64x128xf32>
    %2 = tpu.matmul %0, %1, %cst {dimension_numbers = #tpu.dot_dimension_numbers<[1], [0], [0], [1], [0, 0, 1, 1], [], []>} : vector<64x32xf32>, vector<32x128xf32>, vector<64x128xf32> -> vector<64x128xf32>
    %c0_3 = arith.constant 0 : index
    %c0_4 = arith.constant 0 : index
    %3 = vector.load %arg5[%c0_3, %c0_4] : memref<1x128xf32, #tpu.memory_space<vmem>>, vector<1x128xf32>
    %4 = vector.broadcast %3 : vector<1x128xf32> to vector<64x128xf32>
    %5 = arith.addf %2, %4 : vector<64x128xf32>
    %6 = vector.shape_cast %5 : vector<64x128xf32> to vector<8x8x128xf32>
    %c0_5 = arith.constant 0 : index
    %c0_6 = arith.constant 0 : index
    %7 = vector.load %arg0[%c0_5, %c0_6] : memref<8x1xi32, #tpu.memory_space<vmem>>, vector<8x1xi32>
    %c0_7 = arith.constant 0 : index
    %c0_8 = arith.constant 0 : index
    %8 = vector.load %arg4[%c0_7, %c0_8] : memref<32x128xf32, #tpu.memory_space<vmem>>, vector<32x128xf32>
    %cst_9 = arith.constant 0.000000e+00 : f32
    %9 = vector.broadcast %cst_9 : f32 to vector<8x32xf32>
    %cst_10 = arith.constant 0.000000e+00 : f32
    %10 = vector.broadcast %cst_10 : f32 to vector<8x32xf32>
    %11 = vector.extract_strided_slice %6 {offsets = [0, 0, 0], sizes = [8, 1, 128], strides = [1, 1, 1]} : vector<8x8x128xf32> to vector<8x1x128xf32>
    %12 = vector.shape_cast %11 : vector<8x1x128xf32> to vector<8x128xf32>
    %cst_11 = arith.constant dense<0.000000e+00> : vector<8x128xf32>
    %13 = tpu.matmul %9, %8, %cst_11 {dimension_numbers = #tpu.dot_dimension_numbers<[1], [0], [0], [1], [0, 0, 1, 1], [], []>} : vector<8x32xf32>, vector<32x128xf32>, vector<8x128xf32> -> vector<8x128xf32>
    %14 = arith.addf %13, %12 : vector<8x128xf32>
    %15 = arith.negf %14 : vector<8x128xf32>
    %16 = math.exp %15 : vector<8x128xf32>
    %cst_12 = arith.constant 1.000000e+00 : f32
    %17 = vector.broadcast %cst_12 : f32 to vector<8x128xf32>
    %18 = arith.addf %17, %16 : vector<8x128xf32>
    %19 = arith.divf %17, %18 : vector<8x128xf32>
    %20 = math.tanh %14 : vector<8x128xf32>
    %21 = vector.extract_strided_slice %19 {offsets = [0, 0], sizes = [8, 32], strides = [1, 1]} : vector<8x128xf32> to vector<8x32xf32>
    %22 = vector.extract_strided_slice %19 {offsets = [0, 32], sizes = [8, 32], strides = [1, 1]} : vector<8x128xf32> to vector<8x32xf32>
    %23 = vector.extract_strided_slice %20 {offsets = [0, 64], sizes = [8, 32], strides = [1, 1]} : vector<8x128xf32> to vector<8x32xf32>
    %24 = vector.extract_strided_slice %19 {offsets = [0, 96], sizes = [8, 32], strides = [1, 1]} : vector<8x128xf32> to vector<8x32xf32>
    %25 = arith.mulf %22, %10 : vector<8x32xf32>
    %26 = arith.mulf %21, %23 : vector<8x32xf32>
    %27 = arith.addf %25, %26 : vector<8x32xf32>
    %28 = math.tanh %27 : vector<8x32xf32>
    %29 = arith.mulf %24, %28 : vector<8x32xf32>
    %c0_i32 = arith.constant 0 : i32
    %30 = vector.broadcast %c0_i32 : i32 to vector<8x1xi32>
    %31 = arith.cmpi sgt, %7, %30 : vector<8x1xi32>
    %32 = vector.shape_cast %31 : vector<8x1xi1> to vector<8x1xi1>
    %33 = vector.broadcast %32 : vector<8x1xi1> to vector<8x32xi1>
    %34 = arith.select %33, %29, %9 : vector<8x32xi1>, vector<8x32xf32>
    %35 = vector.shape_cast %31 : vector<8x1xi1> to vector<8x1xi1>
    %36 = vector.broadcast %35 : vector<8x1xi1> to vector<8x32xi1>
    %37 = arith.select %36, %27, %10 : vector<8x32xi1>, vector<8x32xf32>
    %38 = vector.extract_strided_slice %6 {offsets = [0, 1, 0], sizes = [8, 1, 128], strides = [1, 1, 1]} : vector<8x8x128xf32> to vector<8x1x128xf32>
    %39 = vector.shape_cast %38 : vector<8x1x128xf32> to vector<8x128xf32>
    %cst_13 = arith.constant dense<0.000000e+00> : vector<8x128xf32>
    %40 = tpu.matmul %34, %8, %cst_13 {dimension_numbers = #tpu.dot_dimension_numbers<[1], [0], [0], [1], [0, 0, 1, 1], [], []>} : vector<8x32xf32>, vector<32x128xf32>, vector<8x128xf32> -> vector<8x128xf32>
    %41 = arith.addf %40, %39 : vector<8x128xf32>
    %42 = arith.negf %41 : vector<8x128xf32>
    %43 = math.exp %42 : vector<8x128xf32>
    %cst_14 = arith.constant 1.000000e+00 : f32
    %44 = vector.broadcast %cst_14 : f32 to vector<8x128xf32>
    %45 = arith.addf %44, %43 : vector<8x128xf32>
    %46 = arith.divf %44, %45 : vector<8x128xf32>
    %47 = math.tanh %41 : vector<8x128xf32>
    %48 = vector.extract_strided_slice %46 {offsets = [0, 0], sizes = [8, 32], strides = [1, 1]} : vector<8x128xf32> to vector<8x32xf32>
    %49 = vector.extract_strided_slice %46 {offsets = [0, 32], sizes = [8, 32], strides = [1, 1]} : vector<8x128xf32> to vector<8x32xf32>
    %50 = vector.extract_strided_slice %47 {offsets = [0, 64], sizes = [8, 32], strides = [1, 1]} : vector<8x128xf32> to vector<8x32xf32>
    %51 = vector.extract_strided_slice %46 {offsets = [0, 96], sizes = [8, 32], strides = [1, 1]} : vector<8x128xf32> to vector<8x32xf32>
    %52 = arith.mulf %49, %37 : vector<8x32xf32>
    %53 = arith.mulf %48, %50 : vector<8x32xf32>
    %54 = arith.addf %52, %53 : vector<8x32xf32>
    %55 = math.tanh %54 : vector<8x32xf32>
    %56 = arith.mulf %51, %55 : vector<8x32xf32>
    %c1_i32 = arith.constant 1 : i32
    %57 = vector.broadcast %c1_i32 : i32 to vector<8x1xi32>
    %58 = arith.cmpi sgt, %7, %57 : vector<8x1xi32>
    %59 = vector.shape_cast %58 : vector<8x1xi1> to vector<8x1xi1>
    %60 = vector.broadcast %59 : vector<8x1xi1> to vector<8x32xi1>
    %61 = arith.select %60, %56, %34 : vector<8x32xi1>, vector<8x32xf32>
    %62 = vector.shape_cast %58 : vector<8x1xi1> to vector<8x1xi1>
    %63 = vector.broadcast %62 : vector<8x1xi1> to vector<8x32xi1>
    %64 = arith.select %63, %54, %37 : vector<8x32xi1>, vector<8x32xf32>
    %65 = vector.extract_strided_slice %6 {offsets = [0, 2, 0], sizes = [8, 1, 128], strides = [1, 1, 1]} : vector<8x8x128xf32> to vector<8x1x128xf32>
    %66 = vector.shape_cast %65 : vector<8x1x128xf32> to vector<8x128xf32>
    %cst_15 = arith.constant dense<0.000000e+00> : vector<8x128xf32>
    %67 = tpu.matmul %61, %8, %cst_15 {dimension_numbers = #tpu.dot_dimension_numbers<[1], [0], [0], [1], [0, 0, 1, 1], [], []>} : vector<8x32xf32>, vector<32x128xf32>, vector<8x128xf32> -> vector<8x128xf32>
    %68 = arith.addf %67, %66 : vector<8x128xf32>
    %69 = arith.negf %68 : vector<8x128xf32>
    %70 = math.exp %69 : vector<8x128xf32>
    %cst_16 = arith.constant 1.000000e+00 : f32
    %71 = vector.broadcast %cst_16 : f32 to vector<8x128xf32>
    %72 = arith.addf %71, %70 : vector<8x128xf32>
    %73 = arith.divf %71, %72 : vector<8x128xf32>
    %74 = math.tanh %68 : vector<8x128xf32>
    %75 = vector.extract_strided_slice %73 {offsets = [0, 0], sizes = [8, 32], strides = [1, 1]} : vector<8x128xf32> to vector<8x32xf32>
    %76 = vector.extract_strided_slice %73 {offsets = [0, 32], sizes = [8, 32], strides = [1, 1]} : vector<8x128xf32> to vector<8x32xf32>
    %77 = vector.extract_strided_slice %74 {offsets = [0, 64], sizes = [8, 32], strides = [1, 1]} : vector<8x128xf32> to vector<8x32xf32>
    %78 = vector.extract_strided_slice %73 {offsets = [0, 96], sizes = [8, 32], strides = [1, 1]} : vector<8x128xf32> to vector<8x32xf32>
    %79 = arith.mulf %76, %64 : vector<8x32xf32>
    %80 = arith.mulf %75, %77 : vector<8x32xf32>
    %81 = arith.addf %79, %80 : vector<8x32xf32>
    %82 = math.tanh %81 : vector<8x32xf32>
    %83 = arith.mulf %78, %82 : vector<8x32xf32>
    %c2_i32 = arith.constant 2 : i32
    %84 = vector.broadcast %c2_i32 : i32 to vector<8x1xi32>
    %85 = arith.cmpi sgt, %7, %84 : vector<8x1xi32>
    %86 = vector.shape_cast %85 : vector<8x1xi1> to vector<8x1xi1>
    %87 = vector.broadcast %86 : vector<8x1xi1> to vector<8x32xi1>
    %88 = arith.select %87, %83, %61 : vector<8x32xi1>, vector<8x32xf32>
    %89 = vector.shape_cast %85 : vector<8x1xi1> to vector<8x1xi1>
    %90 = vector.broadcast %89 : vector<8x1xi1> to vector<8x32xi1>
    %91 = arith.select %90, %81, %64 : vector<8x32xi1>, vector<8x32xf32>
    %92 = vector.extract_strided_slice %6 {offsets = [0, 3, 0], sizes = [8, 1, 128], strides = [1, 1, 1]} : vector<8x8x128xf32> to vector<8x1x128xf32>
    %93 = vector.shape_cast %92 : vector<8x1x128xf32> to vector<8x128xf32>
    %cst_17 = arith.constant dense<0.000000e+00> : vector<8x128xf32>
    %94 = tpu.matmul %88, %8, %cst_17 {dimension_numbers = #tpu.dot_dimension_numbers<[1], [0], [0], [1], [0, 0, 1, 1], [], []>} : vector<8x32xf32>, vector<32x128xf32>, vector<8x128xf32> -> vector<8x128xf32>
    %95 = arith.addf %94, %93 : vector<8x128xf32>
    %96 = arith.negf %95 : vector<8x128xf32>
    %97 = math.exp %96 : vector<8x128xf32>
    %cst_18 = arith.constant 1.000000e+00 : f32
    %98 = vector.broadcast %cst_18 : f32 to vector<8x128xf32>
    %99 = arith.addf %98, %97 : vector<8x128xf32>
    %100 = arith.divf %98, %99 : vector<8x128xf32>
    %101 = math.tanh %95 : vector<8x128xf32>
    %102 = vector.extract_strided_slice %100 {offsets = [0, 0], sizes = [8, 32], strides = [1, 1]} : vector<8x128xf32> to vector<8x32xf32>
    %103 = vector.extract_strided_slice %100 {offsets = [0, 32], sizes = [8, 32], strides = [1, 1]} : vector<8x128xf32> to vector<8x32xf32>
    %104 = vector.extract_strided_slice %101 {offsets = [0, 64], sizes = [8, 32], strides = [1, 1]} : vector<8x128xf32> to vector<8x32xf32>
    %105 = vector.extract_strided_slice %100 {offsets = [0, 96], sizes = [8, 32], strides = [1, 1]} : vector<8x128xf32> to vector<8x32xf32>
    %106 = arith.mulf %103, %91 : vector<8x32xf32>
    %107 = arith.mulf %102, %104 : vector<8x32xf32>
    %108 = arith.addf %106, %107 : vector<8x32xf32>
    %109 = math.tanh %108 : vector<8x32xf32>
    %110 = arith.mulf %105, %109 : vector<8x32xf32>
    %c3_i32 = arith.constant 3 : i32
    %111 = vector.broadcast %c3_i32 : i32 to vector<8x1xi32>
    %112 = arith.cmpi sgt, %7, %111 : vector<8x1xi32>
    %113 = vector.shape_cast %112 : vector<8x1xi1> to vector<8x1xi1>
    %114 = vector.broadcast %113 : vector<8x1xi1> to vector<8x32xi1>
    %115 = arith.select %114, %110, %88 : vector<8x32xi1>, vector<8x32xf32>
    %116 = vector.shape_cast %112 : vector<8x1xi1> to vector<8x1xi1>
    %117 = vector.broadcast %116 : vector<8x1xi1> to vector<8x32xi1>
    %118 = arith.select %117, %108, %91 : vector<8x32xi1>, vector<8x32xf32>
    %119 = vector.extract_strided_slice %6 {offsets = [0, 4, 0], sizes = [8, 1, 128], strides = [1, 1, 1]} : vector<8x8x128xf32> to vector<8x1x128xf32>
    %120 = vector.shape_cast %119 : vector<8x1x128xf32> to vector<8x128xf32>
    %cst_19 = arith.constant dense<0.000000e+00> : vector<8x128xf32>
    %121 = tpu.matmul %115, %8, %cst_19 {dimension_numbers = #tpu.dot_dimension_numbers<[1], [0], [0], [1], [0, 0, 1, 1], [], []>} : vector<8x32xf32>, vector<32x128xf32>, vector<8x128xf32> -> vector<8x128xf32>
    %122 = arith.addf %121, %120 : vector<8x128xf32>
    %123 = arith.negf %122 : vector<8x128xf32>
    %124 = math.exp %123 : vector<8x128xf32>
    %cst_20 = arith.constant 1.000000e+00 : f32
    %125 = vector.broadcast %cst_20 : f32 to vector<8x128xf32>
    %126 = arith.addf %125, %124 : vector<8x128xf32>
    %127 = arith.divf %125, %126 : vector<8x128xf32>
    %128 = math.tanh %122 : vector<8x128xf32>
    %129 = vector.extract_strided_slice %127 {offsets = [0, 0], sizes = [8, 32], strides = [1, 1]} : vector<8x128xf32> to vector<8x32xf32>
    %130 = vector.extract_strided_slice %127 {offsets = [0, 32], sizes = [8, 32], strides = [1, 1]} : vector<8x128xf32> to vector<8x32xf32>
    %131 = vector.extract_strided_slice %128 {offsets = [0, 64], sizes = [8, 32], strides = [1, 1]} : vector<8x128xf32> to vector<8x32xf32>
    %132 = vector.extract_strided_slice %127 {offsets = [0, 96], sizes = [8, 32], strides = [1, 1]} : vector<8x128xf32> to vector<8x32xf32>
    %133 = arith.mulf %130, %118 : vector<8x32xf32>
    %134 = arith.mulf %129, %131 : vector<8x32xf32>
    %135 = arith.addf %133, %134 : vector<8x32xf32>
    %136 = math.tanh %135 : vector<8x32xf32>
    %137 = arith.mulf %132, %136 : vector<8x32xf32>
    %c4_i32 = arith.constant 4 : i32
    %138 = vector.broadcast %c4_i32 : i32 to vector<8x1xi32>
    %139 = arith.cmpi sgt, %7, %138 : vector<8x1xi32>
    %140 = vector.shape_cast %139 : vector<8x1xi1> to vector<8x1xi1>
    %141 = vector.broadcast %140 : vector<8x1xi1> to vector<8x32xi1>
    %142 = arith.select %141, %137, %115 : vector<8x32xi1>, vector<8x32xf32>
    %143 = vector.shape_cast %139 : vector<8x1xi1> to vector<8x1xi1>
    %144 = vector.broadcast %143 : vector<8x1xi1> to vector<8x32xi1>
    %145 = arith.select %144, %135, %118 : vector<8x32xi1>, vector<8x32xf32>
    %146 = vector.extract_strided_slice %6 {offsets = [0, 5, 0], sizes = [8, 1, 128], strides = [1, 1, 1]} : vector<8x8x128xf32> to vector<8x1x128xf32>
    %147 = vector.shape_cast %146 : vector<8x1x128xf32> to vector<8x128xf32>
    %cst_21 = arith.constant dense<0.000000e+00> : vector<8x128xf32>
    %148 = tpu.matmul %142, %8, %cst_21 {dimension_numbers = #tpu.dot_dimension_numbers<[1], [0], [0], [1], [0, 0, 1, 1], [], []>} : vector<8x32xf32>, vector<32x128xf32>, vector<8x128xf32> -> vector<8x128xf32>
    %149 = arith.addf %148, %147 : vector<8x128xf32>
    %150 = arith.negf %149 : vector<8x128xf32>
    %151 = math.exp %150 : vector<8x128xf32>
    %cst_22 = arith.constant 1.000000e+00 : f32
    %152 = vector.broadcast %cst_22 : f32 to vector<8x128xf32>
    %153 = arith.addf %152, %151 : vector<8x128xf32>
    %154 = arith.divf %152, %153 : vector<8x128xf32>
    %155 = math.tanh %149 : vector<8x128xf32>
    %156 = vector.extract_strided_slice %154 {offsets = [0, 0], sizes = [8, 32], strides = [1, 1]} : vector<8x128xf32> to vector<8x32xf32>
    %157 = vector.extract_strided_slice %154 {offsets = [0, 32], sizes = [8, 32], strides = [1, 1]} : vector<8x128xf32> to vector<8x32xf32>
    %158 = vector.extract_strided_slice %155 {offsets = [0, 64], sizes = [8, 32], strides = [1, 1]} : vector<8x128xf32> to vector<8x32xf32>
    %159 = vector.extract_strided_slice %154 {offsets = [0, 96], sizes = [8, 32], strides = [1, 1]} : vector<8x128xf32> to vector<8x32xf32>
    %160 = arith.mulf %157, %145 : vector<8x32xf32>
    %161 = arith.mulf %156, %158 : vector<8x32xf32>
    %162 = arith.addf %160, %161 : vector<8x32xf32>
    %163 = math.tanh %162 : vector<8x32xf32>
    %164 = arith.mulf %159, %163 : vector<8x32xf32>
    %c5_i32 = arith.constant 5 : i32
    %165 = vector.broadcast %c5_i32 : i32 to vector<8x1xi32>
    %166 = arith.cmpi sgt, %7, %165 : vector<8x1xi32>
    %167 = vector.shape_cast %166 : vector<8x1xi1> to vector<8x1xi1>
    %168 = vector.broadcast %167 : vector<8x1xi1> to vector<8x32xi1>
    %169 = arith.select %168, %164, %142 : vector<8x32xi1>, vector<8x32xf32>
    %170 = vector.shape_cast %166 : vector<8x1xi1> to vector<8x1xi1>
    %171 = vector.broadcast %170 : vector<8x1xi1> to vector<8x32xi1>
    %172 = arith.select %171, %162, %145 : vector<8x32xi1>, vector<8x32xf32>
    %173 = vector.extract_strided_slice %6 {offsets = [0, 6, 0], sizes = [8, 1, 128], strides = [1, 1, 1]} : vector<8x8x128xf32> to vector<8x1x128xf32>
    %174 = vector.shape_cast %173 : vector<8x1x128xf32> to vector<8x128xf32>
    %cst_23 = arith.constant dense<0.000000e+00> : vector<8x128xf32>
    %175 = tpu.matmul %169, %8, %cst_23 {dimension_numbers = #tpu.dot_dimension_numbers<[1], [0], [0], [1], [0, 0, 1, 1], [], []>} : vector<8x32xf32>, vector<32x128xf32>, vector<8x128xf32> -> vector<8x128xf32>
    %176 = arith.addf %175, %174 : vector<8x128xf32>
    %177 = arith.negf %176 : vector<8x128xf32>
    %178 = math.exp %177 : vector<8x128xf32>
    %cst_24 = arith.constant 1.000000e+00 : f32
    %179 = vector.broadcast %cst_24 : f32 to vector<8x128xf32>
    %180 = arith.addf %179, %178 : vector<8x128xf32>
    %181 = arith.divf %179, %180 : vector<8x128xf32>
    %182 = math.tanh %176 : vector<8x128xf32>
    %183 = vector.extract_strided_slice %181 {offsets = [0, 0], sizes = [8, 32], strides = [1, 1]} : vector<8x128xf32> to vector<8x32xf32>
    %184 = vector.extract_strided_slice %181 {offsets = [0, 32], sizes = [8, 32], strides = [1, 1]} : vector<8x128xf32> to vector<8x32xf32>
    %185 = vector.extract_strided_slice %182 {offsets = [0, 64], sizes = [8, 32], strides = [1, 1]} : vector<8x128xf32> to vector<8x32xf32>
    %186 = vector.extract_strided_slice %181 {offsets = [0, 96], sizes = [8, 32], strides = [1, 1]} : vector<8x128xf32> to vector<8x32xf32>
    %187 = arith.mulf %184, %172 : vector<8x32xf32>
    %188 = arith.mulf %183, %185 : vector<8x32xf32>
    %189 = arith.addf %187, %188 : vector<8x32xf32>
    %190 = math.tanh %189 : vector<8x32xf32>
    %191 = arith.mulf %186, %190 : vector<8x32xf32>
    %c6_i32 = arith.constant 6 : i32
    %192 = vector.broadcast %c6_i32 : i32 to vector<8x1xi32>
    %193 = arith.cmpi sgt, %7, %192 : vector<8x1xi32>
    %194 = vector.shape_cast %193 : vector<8x1xi1> to vector<8x1xi1>
    %195 = vector.broadcast %194 : vector<8x1xi1> to vector<8x32xi1>
    %196 = arith.select %195, %191, %169 : vector<8x32xi1>, vector<8x32xf32>
    %197 = vector.shape_cast %193 : vector<8x1xi1> to vector<8x1xi1>
    %198 = vector.broadcast %197 : vector<8x1xi1> to vector<8x32xi1>
    %199 = arith.select %198, %189, %172 : vector<8x32xi1>, vector<8x32xf32>
    %200 = vector.extract_strided_slice %6 {offsets = [0, 7, 0], sizes = [8, 1, 128], strides = [1, 1, 1]} : vector<8x8x128xf32> to vector<8x1x128xf32>
    %201 = vector.shape_cast %200 : vector<8x1x128xf32> to vector<8x128xf32>
    %cst_25 = arith.constant dense<0.000000e+00> : vector<8x128xf32>
    %202 = tpu.matmul %196, %8, %cst_25 {dimension_numbers = #tpu.dot_dimension_numbers<[1], [0], [0], [1], [0, 0, 1, 1], [], []>} : vector<8x32xf32>, vector<32x128xf32>, vector<8x128xf32> -> vector<8x128xf32>
    %203 = arith.addf %202, %201 : vector<8x128xf32>
    %204 = arith.negf %203 : vector<8x128xf32>
    %205 = math.exp %204 : vector<8x128xf32>
    %cst_26 = arith.constant 1.000000e+00 : f32
    %206 = vector.broadcast %cst_26 : f32 to vector<8x128xf32>
    %207 = arith.addf %206, %205 : vector<8x128xf32>
    %208 = arith.divf %206, %207 : vector<8x128xf32>
    %209 = math.tanh %203 : vector<8x128xf32>
    %210 = vector.extract_strided_slice %208 {offsets = [0, 0], sizes = [8, 32], strides = [1, 1]} : vector<8x128xf32> to vector<8x32xf32>
    %211 = vector.extract_strided_slice %208 {offsets = [0, 32], sizes = [8, 32], strides = [1, 1]} : vector<8x128xf32> to vector<8x32xf32>
    %212 = vector.extract_strided_slice %209 {offsets = [0, 64], sizes = [8, 32], strides = [1, 1]} : vector<8x128xf32> to vector<8x32xf32>
    %213 = vector.extract_strided_slice %208 {offsets = [0, 96], sizes = [8, 32], strides = [1, 1]} : vector<8x128xf32> to vector<8x32xf32>
    %214 = arith.mulf %211, %199 : vector<8x32xf32>
    %215 = arith.mulf %210, %212 : vector<8x32xf32>
    %216 = arith.addf %214, %215 : vector<8x32xf32>
    %217 = math.tanh %216 : vector<8x32xf32>
    %218 = arith.mulf %213, %217 : vector<8x32xf32>
    %c7_i32 = arith.constant 7 : i32
    %219 = vector.broadcast %c7_i32 : i32 to vector<8x1xi32>
    %220 = arith.cmpi sgt, %7, %219 : vector<8x1xi32>
    %221 = vector.shape_cast %220 : vector<8x1xi1> to vector<8x1xi1>
    %222 = vector.broadcast %221 : vector<8x1xi1> to vector<8x32xi1>
    %223 = arith.select %222, %218, %196 : vector<8x32xi1>, vector<8x32xf32>
    %c0_27 = arith.constant 0 : index
    %c0_28 = arith.constant 0 : index
    %224 = vector.load %arg2[%c0_27, %c0_28] : memref<8x8xf32, #tpu.memory_space<vmem>>, vector<8x8xf32>
    %c0_29 = arith.constant 0 : index
    %c0_30 = arith.constant 0 : index
    %225 = vector.load %arg6[%c0_29, %c0_30] : memref<32x32xf32, #tpu.memory_space<vmem>>, vector<32x32xf32>
    %cst_31 = arith.constant dense<0.000000e+00> : vector<8x32xf32>
    %226 = tpu.matmul %223, %225, %cst_31 {dimension_numbers = #tpu.dot_dimension_numbers<[1], [0], [0], [1], [0, 0, 1, 1], [], []>} : vector<8x32xf32>, vector<32x32xf32>, vector<8x32xf32> -> vector<8x32xf32>
    %c0_32 = arith.constant 0 : index
    %c0_33 = arith.constant 0 : index
    %227 = vector.load %arg7[%c0_32, %c0_33] : memref<8x32xf32, #tpu.memory_space<vmem>>, vector<8x32xf32>
    %cst_34 = arith.constant dense<0.000000e+00> : vector<8x32xf32>
    %228 = tpu.matmul %224, %227, %cst_34 {dimension_numbers = #tpu.dot_dimension_numbers<[1], [0], [0], [1], [0, 0, 1, 1], [], []>} : vector<8x8xf32>, vector<8x32xf32>, vector<8x32xf32> -> vector<8x32xf32>
    %229 = arith.addf %226, %228 : vector<8x32xf32>
    %c0_35 = arith.constant 0 : index
    %c0_36 = arith.constant 0 : index
    %230 = vector.load %arg8[%c0_35, %c0_36] : memref<1x32xf32, #tpu.memory_space<vmem>>, vector<1x32xf32>
    %231 = vector.broadcast %230 : vector<1x32xf32> to vector<8x32xf32>
    %232 = arith.addf %229, %231 : vector<8x32xf32>
    %cst_37 = arith.constant 0.000000e+00 : f32
    %233 = vector.broadcast %cst_37 : f32 to vector<8x32xf32>
    %234 = arith.maximumf %232, %233 : vector<8x32xf32>
    %c0_38 = arith.constant 0 : index
    %c0_39 = arith.constant 0 : index
    %235 = vector.load %arg9[%c0_38, %c0_39] : memref<32x16xf32, #tpu.memory_space<vmem>>, vector<32x16xf32>
    %cst_40 = arith.constant dense<0.000000e+00> : vector<8x16xf32>
    %236 = tpu.matmul %234, %235, %cst_40 {dimension_numbers = #tpu.dot_dimension_numbers<[1], [0], [0], [1], [0, 0, 1, 1], [], []>} : vector<8x32xf32>, vector<32x16xf32>, vector<8x16xf32> -> vector<8x16xf32>
    %c0_41 = arith.constant 0 : index
    %c0_42 = arith.constant 0 : index
    %237 = vector.load %arg10[%c0_41, %c0_42] : memref<1x16xf32, #tpu.memory_space<vmem>>, vector<1x16xf32>
    %238 = vector.broadcast %237 : vector<1x16xf32> to vector<8x16xf32>
    %239 = arith.addf %236, %238 : vector<8x16xf32>
    %cst_43 = arith.constant 0.000000e+00 : f32
    %240 = vector.broadcast %cst_43 : f32 to vector<8x16xf32>
    %241 = arith.maximumf %239, %240 : vector<8x16xf32>
    %242 = tpu.concatenate %241, %224 in 1 : vector<8x16xf32>, vector<8x8xf32> -> vector<8x24xf32>
    %c0_44 = arith.constant 0 : index
    %c0_45 = arith.constant 0 : index
    %243 = vector.load %arg11[%c0_44, %c0_45] : memref<8x24xf32, #tpu.memory_space<vmem>>, vector<8x24xf32>
    tpu.vector_store %arg11[%c0_44, %c0_45], %242 {strides = array<i32>} : memref<8x24xf32, #tpu.memory_space<vmem>>, vector<8x24xf32>,
    return
  }
}

</mosaic_0001>

<bundles_post_ra>
// kernel: my_lstm_output_hidden.1
= control target key start
LH: loop header
LB: loop body
LE: loop exit
PB: predicated region body
PF: predicated region fallthrough
CT: control target
= control target key end

     0   :  { %16 = vsyncpa [#allocation3], 0  ;;  %s1592_s0 = inlined_call_operand.vmem [shape: s32[8,1], index: 0, kind: input, shape index: {}]   ;;  %s1593_s1 = inlined_call_operand.hbm [shape: f32[64,32], index: 1, kind: input, shape index: {}]   ;;  %s1594_s2 = inlined_call_operand.vmem [shape: f32[8,8], index: 2, kind: input, shape index: {}]   ;;  %s1595_s3 = inlined_call_operand.vmem [shape: f32[32,128], index: 3, kind: input, shape index: {}]   ;;  %s1596_s4 = inlined_call_operand.hbm [shape: f32[32,128], index: 4, kind: input, shape index: {}]   ;;  %s1597_s5 = inlined_call_operand.vmem [shape: f32[1,128], index: 5, kind: input, shape index: {}]   ;;  %s1598_s6 = inlined_call_operand.hbm [shape: f32[32,32], index: 6, kind: input, shape index: {}]   ;;  %s1599_s7 = inlined_call_operand.vmem [shape: f32[8,32], index: 7, kind: input, shape index: {}]   ;;  %s1600_s8 = inlined_call_operand.vmem [shape: f32[1,32], index: 8, kind: input, shape index: {}]   ;;  %s1601_s9 = inlined_call_operand.vmem [shape: f32[32,16], index: 9, kind: input, shape index: {}]   ;;  %s1602_s10 = inlined_call_operand.vmem [shape: f32[1,16], index: 10, kind: input, shape index: {}]   ;;  %s1603_s11 = inlined_call_operand.hbm [shape: f32[8,24], index: 11, kind: output, shape index: {}]  }
   0x1   :  { %17 = vsyncpa [#allocation6], 0 }
   0x2   :  { %18 = vsyncpa [#allocation4], 0  ;;  %s42_s19 = sshll.u32 %s1596_s4, 4  ;;  %s1200_s20 = smov [#allocation5]   ;;  %s43_s19 = int_to_ptr.hbm [resolvable:$true] %s42_s19 }
   0x3   :  { %s44_s21 = sshll.u32 %s1200_s20, 4  ;;  %s25_s24 = sshll.u32 %s1593_s1, 4  ;;  %s45_s21 = int_to_ptr.vmem [resolvable:$true] %s44_s21  ;;  %s26_s24 = int_to_ptr.hbm [resolvable:$true] %s25_s24 }
   0x4   :  { %s1201_s25 = smov 128   ;;  %s1202_s26 = smov 8  }
   0x5   :  { %50 = dma.hbm_to_vmem [thread:$0]  %s43_s19, 512, %s45_s21, [#allocation6], %s1201_s25, %s1201_s25, %s1202_s26  }
   0x6   :  { %s1203_s27 = smov [#allocation2]   ;;  %s57_s12 = sshll.u32 %s1598_s6, 4  ;;  %s58_s12 = int_to_ptr.hbm [resolvable:$true] %s57_s12 }
   0x7   :  { %s27_s28 = sshll.u32 %s1203_s27, 4  ;;  %s1204_s4 = smov [#allocation7]   ;;  %s28_s28 = int_to_ptr.vmem [resolvable:$true] %s27_s28 }
   0x8   :  { %33 = dma.hbm_to_vmem [thread:$0]  %s26_s24, 1024, %s28_s28, [#allocation3], %s1201_s25, %s1201_s25, %s1202_s26  }
   0x9   :  { %s59_s13 = sshll.u32 %s1204_s4, 4  ;;  %s60_s13 = int_to_ptr.vmem [resolvable:$true] %s59_s13 }
   0xa   :  { %65 = dma.hbm_to_vmem [thread:$0]  %s58_s12, 512, %s60_s13, [#allocation6], %s1201_s25, %s1201_s25, %s1202_s26  }
   0xb   :  { %1194 = dma.done.wait [#allocation3], 1024  }
   0xc   :  { %1195 = vsyncadd [#allocation3], 4294966272 }
   0xd   :  { %1196 = dma.done.wait [#allocation6], 1024  }
   0xe   :  { %1197 = vsyncadd [#allocation6], 4294966272  ;;  %v97_v0 = vld [vmem:[%s1595_s3 + $0x18] sm:$0xff]  ;;  %v96_v1 = vld [vmem:[%s1595_s3 + $0x10] sm:$0xff]  ;;  %vm102_vm0 = vcmask 261120   ;;  %v1205_v13 = vmov 0.0  }
   0xf   :  { %139 = vmatpush.msra.mxu0 %v97_v0  ;;  %1010 = vmatpush.msra.mxu3 %v97_v0  ;;  %v95_v2 = vld [vmem:[%s1595_s3 + $0x8] sm:$0xff]  ;;  %v94_v3 = vld [vmem:[%s1595_s3] sm:$0xff]  ;;  %v92_v5 = vld [vmem:[#allocation2 + $0x30] sm:$0xff]  ;;  %vm182_vm1 = vcmask 1041409   ;;  %vm185_vm2 = vcmask 1042434   ;;  %vm188_vm3 = vcmask 1043459  }
  0x10   :  { %1009 = vmatpush.msra.mxu1 %v97_v0  ;;  %v86_v4 = vld [vmem:[#allocation2] sm:$0xff]  ;;  %v91_v6 = vld [vmem:[#allocation2 + $0x28] sm:$0xff]  ;;  %v1294_v7 = vld [vmem:[#allocation5 + $0x18] sm:$0xff]  ;;  %vm191_vm4 = vcmask 1044484   ;;  %vm194_vm5 = vcmask 1045509   ;;  %vm197_vm6 = vcmask 1046534  }
  0x11   :  { %140 = vmatpush.msra.mxu0 %v96_v1  ;;  %1012 = vmatpush.msra.mxu3 %v96_v1  ;;  %v1298_v8 = vld [vmem:[#allocation5 + $0x10] sm:$0xff]  ;;  %v1303_v9 = vld [vmem:[#allocation5 + $0x8] sm:$0xff]  ;;  %v93_v11 = vld [vmem:[#allocation2 + $0x38] sm:$0xff]  ;;  %vm200_vm7 = vcmask 1047559   ;;  %s1207_s21 = smov 32   ;;  %s972_s19 = sshll.u32 %s1603_s11, 4  ;;  %s973_s19 = int_to_ptr.hbm [resolvable:$true] %s972_s19 }
  0x12   :  { %1011 = vmatpush.msra.mxu1 %v96_v1  ;;  %303 = vmatpush.msra.mxu2 %v1294_v7  ;;  %v87_v10 = vld [vmem:[#allocation2 + $0x8] sm:$0xff]  ;;  %v1308_v12 = vld [vmem:[#allocation5] sm:$0xff]  ;;  %v88_v14 = vld [vmem:[#allocation2 + $0x10] sm:$0xff] }
  0x13   :  { %141 = vmatpush.msra.mxu0 %v95_v2  ;;  %1014 = vmatpush.msra.mxu3 %v95_v2  ;;  %v89_v15 = vld [vmem:[#allocation2 + $0x18] sm:$0xff]  ;;  %v90_v16 = vld [vmem:[#allocation2 + $0x20] sm:$0xff] }
  0x14   :  { %1013 = vmatpush.msra.mxu1 %v95_v2  ;;  %304 = vmatpush.msra.mxu2 %v1298_v8  ;;  %v1339_v18 = vld [vmem:[%s1597_s5] ss:$0 sm:$0xff]  ;;  %s1206_s5 = smov 64  }
  0x15   :  { %142 = vmatpush.msra.mxu0 %v94_v3  ;;  %1016 = vmatpush.msra.mxu3 %v94_v3 }
  0x16   :  { %983 = vmatmul.msk.f32.vlgmr.msra.gmra.mxu0 %vm102_vm0, %v86_v4  ;;  %989 = vmatmul.msk.f32.vlgmr.msra.gmra.mxu3 %vm102_vm0, %v92_v5 }
  0x17   :  { %1015 = vmatpush.msra.mxu1 %v94_v3  ;;  %388 = vmatpush.msrb.mxu3 %v1294_v7 }
  0x18   :  { %988 = vmatmul.msk.f32.vlgmr.msra.gmra.mxu1 %vm102_vm0, %v91_v6  ;;  %305 = vmatpush.msra.mxu2 %v1303_v9 }
  0x19   :  { %218 = vmatpush.msrb.mxu1 %v1294_v7  ;;  %389 = vmatpush.msrb.mxu3 %v1298_v8 }
  0x1a   :  { %306 = vmatpush.msra.mxu2 %v1308_v12 }
  0x1b   :  { %219 = vmatpush.msrb.mxu1 %v1298_v8  ;;  %390 = vmatpush.msrb.mxu3 %v1303_v9 }
  0x1c   :  { %558 = vmatpush.msrb.mxu2 %v1294_v7 }
  0x1d   :  { %220 = vmatpush.msrb.mxu1 %v1303_v9  ;;  %391 = vmatpush.msrb.mxu3 %v1308_v12 }
  0x1e   :  { %984 = vmatmul.msk.f32.gmra.mxu0 %vm102_vm0, %v87_v10  ;;  %990 = vmatmul.msk.f32.gmra.mxu3 %vm102_vm0, %v93_v11 }
  0x1f   :  { %221 = vmatpush.msrb.mxu1 %v1308_v12  ;;  %643 = vmatpush.msra.mxu3 %v1294_v7 }
  0x20   :  { %222 = vmatmul.f32.vlgmr.msrb.gmra.mxu1 %v1205_v13  ;;  %559 = vmatpush.msrb.mxu2 %v1298_v8 }
  0x21   :  { %473 = vmatpush.msra.mxu1 %v1294_v7  ;;  %644 = vmatpush.msra.mxu3 %v1298_v8 }
  0x22   :  { %560 = vmatpush.msrb.mxu2 %v1303_v9 }
  0x23   :  { %474 = vmatpush.msra.mxu1 %v1298_v8  ;;  %645 = vmatpush.msra.mxu3 %v1303_v9 }
  0x24   :  { %561 = vmatpush.msrb.mxu2 %v1308_v12 }
  0x25   :  { %475 = vmatpush.msra.mxu1 %v1303_v9  ;;  %646 = vmatpush.msra.mxu3 %v1308_v12 }
  0x26   :  { %985 = vmatmul.msk.f32.gmra.mxu0 %vm102_vm0, %v88_v14 }
  0x27   :  { %476 = vmatpush.msra.mxu1 %v1308_v12 }
  0x29   :  { %728 = vmatpush.msrb.mxu1 %v1294_v7 }
  0x2b   :  { %729 = vmatpush.msrb.mxu1 %v1298_v8 }
  0x2d   :  { %730 = vmatpush.msrb.mxu1 %v1303_v9 }
  0x2e   :  { %986 = vmatmul.msk.f32.gmra.mxu0 %vm102_vm0, %v89_v15 }
  0x2f   :  { %731 = vmatpush.msrb.mxu1 %v1308_v12 }
  0x36   :  { %987 = vmatmul.msk.f32.gmra.mxu0 %vm102_vm0, %v90_v16 }
  0x93   :  { %v144_v17 = vpop.f32.mrf.mxu0 }
  0x94   :  { %v1342_v19 = vadd.f32 %v1339_v18, %v144_v17 }
  0x95   :  { %v159_v44 = vpop.f32.mrf.mxu1 }
  0x96   :  { %v274_v22 = vrot.slane %v1342_v19, 1  ;;  %v359_v23 = vrot.slane %v1342_v19, 2  ;;  %v444_v24 = vrot.slane %v1342_v19, 3  ;;  %v529_v25 = vrot.slane %v1342_v19, 4 }
  0x97   :  { %v614_v26 = vrot.slane %v1342_v19, 5  ;;  %v699_v27 = vrot.slane %v1342_v19, 6  ;;  %v784_v31 = vrot.slane %v1342_v19, 7  ;;  %v1370_v46 = vadd.f32 %v1339_v18, %v159_v44 }
  0x99   :  { %v162_v38 = vpop.f32.mrf.mxu3  ;;  %v193_v63 = vrot.slane %v1370_v46, 3  ;;  %v282_v0 = vrot.slane %v1370_v46, 4  ;;  %v367_v2 = vrot.slane %v1370_v46, 5  ;;  %v452_v3 = vrot.slane %v1370_v46, 6 }
  0x9a   :  { %v1374_v54 = vadd.f32 %v1339_v18, %v162_v38  ;;  %v537_v4 = vrot.slane %v1370_v46, 7  ;;  %v708_v10 = vrot.slane %v1370_v46, 1  ;;  %v793_v11 = vrot.slane %v1370_v46, 2 }
  0x9b   :  { %v147_v20 = vpop.f32.mrf.mxu0 }
  0x9c   :  { %v1345_v21 = vadd.f32 %v1339_v18, %v147_v20  ;;  %v196_v6 = vrot.slane %v1374_v54, 2 }
  0x9e   :  { %v275_v28 = vsel %vm182_vm1, %v1345_v21, %v274_v22  ;;  %v360_v29 = vrot.slane %v1345_v21, 1  ;;  %v445_v30 = vrot.slane %v1345_v21, 2  ;;  %v530_v32 = vrot.slane %v1345_v21, 3 }
  0x9f   :  { %v615_v33 = vrot.slane %v1345_v21, 4  ;;  %v700_v34 = vrot.slane %v1345_v21, 5  ;;  %v785_v35 = vrot.slane %v1345_v21, 6  ;;  %v181_v5 = vrot.slane %v1345_v21, 7 }
  0xa0   :  { %v361_v36 = vsel %vm182_vm1, %v360_v29, %v359_v23  ;;  %v446_v37 = vsel %vm182_vm1, %v445_v30, %v444_v24  ;;  %v531_v39 = vsel %vm182_vm1, %v530_v32, %v529_v25  ;;  %v369_v32 = vrot.slane %v1374_v54, 4 }
  0xa1   :  { %v616_v40 = vsel %vm182_vm1, %v615_v33, %v614_v26  ;;  %v701_v41 = vsel %vm182_vm1, %v700_v34, %v699_v27  ;;  %v786_v42 = vsel %vm182_vm1, %v785_v35, %v784_v31  ;;  %v165_v62 = vpop.f32.mrf.mxu3  ;;  %v284_v31 = vrot.slane %v1374_v54, 3 }
  0xa2   :  { %v1393_v13 = vadd.f32 %v1339_v18, %v165_v62  ;;  %v454_v33 = vrot.slane %v1374_v54, 5  ;;  %v539_v34 = vrot.slane %v1374_v54, 6 }
  0xa3   :  { %v150_v43 = vpop.f32.mrf.mxu0 }
  0xa4   :  { %v151_v45 = vadd.f32 %v1339_v18, %v150_v43  ;;  %v286_v38 = vrot.slane %v1393_v13, 2  ;;  %v456_v43 = vrot.slane %v1393_v13, 4 }
  0xa6   :  { %v276_v47 = vrot.slane %v151_v45, 7  ;;  %v362_v48 = vsel %vm185_vm2, %v151_v45, %v361_v36  ;;  %v447_v49 = vrot.slane %v151_v45, 1  ;;  %v532_v50 = vrot.slane %v151_v45, 2 }
  0xa7   :  { %v617_v51 = vrot.slane %v151_v45, 3  ;;  %v702_v52 = vrot.slane %v151_v45, 4  ;;  %v787_v53 = vrot.slane %v151_v45, 5  ;;  %v184_v24 = vrot.slane %v151_v45, 6 }
  0xa8   :  { %v277_v55 = vsel %vm185_vm2, %v276_v47, %v275_v28  ;;  %v448_v56 = vsel %vm185_vm2, %v447_v49, %v446_v37  ;;  %v533_v57 = vsel %vm185_vm2, %v532_v50, %v531_v39  ;;  %v183_v36 = vsel %vm182_vm1, %v181_v5, %v1342_v19 }
  0xa9   :  { %v618_v58 = vsel %vm185_vm2, %v617_v51, %v616_v40  ;;  %v703_v59 = vsel %vm185_vm2, %v702_v52, %v701_v41  ;;  %v788_v60 = vsel %vm185_vm2, %v787_v53, %v786_v42  ;;  %v199_v37 = vrot.slane %v1393_v13, 1 }
  0xaa   :  { %v624_v39 = vrot.slane %v1374_v54, 7  ;;  %v186_v41 = vsel %vm185_vm2, %v184_v24, %v183_v36  ;;  %v371_v42 = vrot.slane %v1393_v13, 3  ;;  %v541_v45 = vrot.slane %v1393_v13, 5 }
  0xab   :  { %v153_v61 = vpop.f32.mrf.mxu0  ;;  %v626_v19 = vrot.slane %v1393_v13, 6  ;;  %v711_v47 = vrot.slane %v1393_v13, 7 }
  0xac   :  { %v154_v1 = vadd.f32 %v1339_v18, %v153_v61  ;;  %v223_v61 = vpop.f32.mrf.mxu1 }
  0xae   :  { %v278_v14 = vrot.slane %v154_v1, 6  ;;  %v363_v15 = vrot.slane %v154_v1, 7  ;;  %v449_v16 = vsel %vm188_vm3, %v154_v1, %v448_v56  ;;  %v534_v17 = vrot.slane %v154_v1, 1 }
  0xaf   :  { %v619_v20 = vrot.slane %v154_v1, 2  ;;  %v704_v22 = vrot.slane %v154_v1, 3  ;;  %v789_v23 = vrot.slane %v154_v1, 4  ;;  %v187_v25 = vrot.slane %v154_v1, 5 }
  0xb0   :  { %v279_v21 = vsel %vm188_vm3, %v278_v14, %v277_v55  ;;  %v364_v26 = vsel %vm188_vm3, %v363_v15, %v362_v48  ;;  %v535_v27 = vsel %vm188_vm3, %v534_v17, %v533_v57 }
  0xb1   :  { %v620_v28 = vsel %vm188_vm3, %v619_v20, %v618_v58  ;;  %v705_v29 = vsel %vm188_vm3, %v704_v22, %v703_v59  ;;  %v790_v30 = vsel %vm188_vm3, %v789_v23, %v788_v60  ;;  %v189_v44 = vsel %vm188_vm3, %v187_v25, %v186_v41 }
  0xb3   :  { %v156_v35 = vpop.f32.mrf.mxu0 }
  0xb4   :  { %v157_v40 = vadd.f32 %v1339_v18, %v156_v35 }
  0xb6   :  { %v190_v48 = vrot.slane %v157_v40, 4  ;;  %v280_v49 = vrot.slane %v157_v40, 5  ;;  %v365_v50 = vrot.slane %v157_v40, 6  ;;  %v450_v51 = vrot.slane %v157_v40, 7 }
  0xb7   :  { %v536_v18 = vsel %vm191_vm4, %v157_v40, %v535_v27  ;;  %v621_v52 = vrot.slane %v157_v40, 1  ;;  %v706_v53 = vrot.slane %v157_v40, 2  ;;  %v791_v55 = vrot.slane %v157_v40, 3 }
  0xb8   :  { %v192_v56 = vsel %vm191_vm4, %v190_v48, %v189_v44  ;;  %v281_v57 = vsel %vm191_vm4, %v280_v49, %v279_v21  ;;  %v366_v58 = vsel %vm191_vm4, %v365_v50, %v364_v26  ;;  %v451_v59 = vsel %vm191_vm4, %v450_v51, %v449_v16  ;;  %v1483_v51 = vld [vmem:[%s1592_s0] sm:$0xff] }
  0xb9   :  { %v195_v60 = vsel %vm194_vm5, %v193_v63, %v192_v56  ;;  %v283_v62 = vsel %vm194_vm5, %v282_v0, %v281_v57  ;;  %v368_v1 = vsel %vm194_vm5, %v367_v2, %v366_v58  ;;  %v453_v5 = vsel %vm194_vm5, %v452_v3, %v451_v59 }
  0xba   :  { %v198_v14 = vsel %vm197_vm6, %v196_v6, %v195_v60  ;;  %v285_v15 = vsel %vm197_vm6, %v284_v31, %v283_v62  ;;  %v370_v17 = vsel %vm197_vm6, %v369_v32, %v368_v1  ;;  %v455_v20 = vsel %vm197_vm6, %v454_v33, %v453_v5 }
  0xbb   :  { %v201_v22 = vsel %vm200_vm7, %v199_v37, %v198_v14  ;;  %v1434_v16 = vsel %vm200_vm7, %v286_v38, %v285_v15  ;;  %v1437_v63 = vsel %vm200_vm7, %v371_v42, %v370_v17  ;;  %v1440_v0 = vsel %vm200_vm7, %v456_v43, %v455_v20 }
  0xbc   :  { %v224_v2 = vadd.f32 %v223_v61, %v201_v22  ;;  %v538_v3 = vsel %vm194_vm5, %v537_v4, %v536_v18  ;;  %v622_v6 = vsel %vm191_vm4, %v621_v52, %v620_v28  ;;  %v707_v23 = vsel %vm191_vm4, %v706_v53, %v705_v29 }
  0xbd   :  { %v540_v24 = vsel %vm197_vm6, %v539_v34, %v538_v3  ;;  %v623_v25 = vsel %vm194_vm5, %v1370_v46, %v622_v6  ;;  %v709_v21 = vsel %vm194_vm5, %v708_v10, %v707_v23  ;;  %v792_v26 = vsel %vm191_vm4, %v791_v55, %v790_v30 }
  0xbe   :  { %1034 = vtanh.f32 %v224_v2  ;;  %v1455_v27 = vsel %vm200_vm7, %v541_v45, %v540_v24  ;;  %v625_v4 = vsel %vm197_vm6, %v624_v39, %v623_v25  ;;  %v795_v28 = vrot.slane %v1374_v54, 1 }
  0xbf   :  { %v1460_v29 = vsel %vm200_vm7, %v626_v19, %v625_v4  ;;  %v710_v31 = vsel %vm197_vm6, %v1374_v54, %v709_v21  ;;  %v794_v10 = vsel %vm194_vm5, %v793_v11, %v792_v26  ;;  %v991_v35 = vmul.f32 -1.442695, %v224_v2 }
  0xc0   :  { %v1468_v30 = vsel %vm200_vm7, %v711_v47, %v710_v31  ;;  %v796_v32 = vsel %vm197_vm6, %v795_v28, %v794_v10  ;;  %v1208_v19 = vmov 0   ;;  %vm263_vm12 = vcmp.gt.s32.totalorder %v1483_v51, 0 }
  0xc1   :  { %v1473_v33 = vsel %vm200_vm7, %v1393_v13, %v796_v32  ;;  %1036 = vpow2.f32 %v991_v35  ;;  %1028 = vset.pattern.permute.xlu1 %v1208_v19  ;;  %1029 = vset.pattern.permute.xlu2 %v1208_v19  ;;  %v264_v18 = vsel %vm263_vm12, 1, %v1208_v19  ;;  %vm348_vm14 = vcmp.gt.s32.totalorder %v1483_v51, 1 }
  0xc2   :  { %1030 = vset.pattern.permute.xlu0 %v1208_v19  ;;  %vm433_vm5 = vcmp.gt.s32.totalorder %v1483_v51, 2  ;;  %vm603_vm12 = vcmp.gt.s32.totalorder %v1483_v51, 4 }
  0xc4   :  { %v1035_v34 = vpop.eup %1034 }
  0xc5   :  { %248 = vrot.lane.b32.xlu0 %v1035_v34, %s1206_s5 }
  0xc7   :  { %v1037_v54 = vpop.eup %1036 }
  0xc8   :  { %v229_v36 = vadd.f32 1.0, %v1037_v54  ;;  %v434_v54 = vsel %vm433_vm5, 1, %v1208_v19 }
  0xca   :  { %1038 = vrcp.f32 %v229_v36  ;;  %v241_v40 = vand.u32 2147483648, %v229_v36  ;;  %vm235_vm9 = vweird.f32 %v229_v36  ;;  %v239_v41 = vand.u32 2147483647, %v229_v36 }
  0xcc   :  { %v242_v42 = vor.u32 1.1754944e-38, %v241_v40  ;;  %vm240_vm11 = vcmp.eq.f32.partialorder %v239_v41, 8.507059e+37 }
  0xd0   :  { %v1039_v46 = vpop.eup %1038 }
  0xd1   :  { %v231_v11 = vmul.f32 %v1039_v46, %v229_v36  ;;  %vm236_vm8 = vweird.f32 %v1039_v46 }
  0xd2   :  { %vm237_vm10 = vmor %vm235_vm9, %vm236_vm8 }
  0xd3   :  { %v232_v37 = vsub.f32 1.0, %v231_v11 }
  0xd5   :  { %v233_v38 = vmul.f32 %v1039_v46, %v232_v37 }
  0xd7   :  { %v234_v39 = vadd.f32 %v1039_v46, %v233_v38 }
  0xd9   :  { %v238_v13 = vsel %vm237_vm10, %v1039_v46, %v234_v39 }
  0xda   :  { %v243_v44 = vsel %vm240_vm11, %v242_v42, %v238_v13  ;;  %vm518_vm11 = vcmp.gt.s32.totalorder %v1483_v51, 3 }
  0xdb   :  { %v246_v47 = vmul.f32 0.0, %v243_v44 }
 0x137   :  { %v249_v43 = vpop.permute.xlu0 %248 }
 0x138   :  { %v251_v45 = vmul.f32 %v249_v43, %v243_v44 }
 0x13a   :  { %253 = vrot.lane.b32.xlu0 %v251_v45, %s1207_s21 }
 0x1ac   :  { %v254_v48 = vpop.permute.xlu0 %253 }
 0x1ad   :  { %v256_v49 = vadd.f32 %v254_v48, %v246_v47 }
 0x1af   :  { %1040 = vtanh.f32 %v256_v49 }
 0x1b5   :  { %v1041_v50 = vpop.eup %1040 }
 0x1b6   :  { %259 = vrot.lane.b32.xlu1 %v1041_v50, %s1206_s5 }
 0x1be   :  { %266 = vperm.xlu1 %1028, %v264_v18  }
 0x228   :  { %v260_v52 = vpop.permute.xlu1 %259 }
 0x229   :  { %v262_v53 = vmul.f32 %v260_v52, %v243_v44 }
 0x230   :  { %v267_v55 = vpop.permute.xlu1 %266 }
 0x231   :  { %vm268_vm13 = vcmp.eq.s32.totalorder %v267_v55, 1 }
 0x232   :  { %v269_v56 = vsel %vm268_vm13, %v262_v53, 0.0  ;;  %v270_v6 = vsel %vm268_vm13, %v256_v49, 0.0 }
 0x233   :  { %272 = vrot.lane.b32.xlu2 %v269_v56, %s1207_s21 }
 0x28d   :  { %v273_v57 = vpop.permute.xlu2 %272 }
 0x28e   :  { %992 = vmatmul.msk.f32.vlgmr.msra.gmra.mxu2 %vm102_vm0, %v273_v57 }
 0x28f   :  { %813 = vmatpush.msra.mxu2 %v1294_v7  ;;  %v349_v7 = vsel %vm348_vm14, 1, %v1208_v19 }
 0x291   :  { %814 = vmatpush.msra.mxu2 %v1298_v8 }
 0x293   :  { %815 = vmatpush.msra.mxu2 %v1303_v9 }
 0x295   :  { %816 = vmatpush.msra.mxu2 %v1308_v12 }
 0x311   :  { %v308_v58 = vpop.f32.mrf.mxu2 }
 0x312   :  { %v309_v59 = vadd.f32 %v308_v58, %v1434_v16 }
 0x314   :  { %1042 = vtanh.f32 %v309_v59  ;;  %v993_v61 = vmul.f32 -1.442695, %v309_v59 }
 0x316   :  { %1044 = vpow2.f32 %v993_v61 }
 0x31a   :  { %v1043_v60 = vpop.eup %1042 }
 0x31b   :  { %333 = vrot.lane.b32.xlu2 %v1043_v60, %s1206_s5 }
 0x31c   :  { %v1045_v62 = vpop.eup %1044 }
 0x31d   :  { %v314_v1 = vadd.f32 1.0, %v1045_v62 }
 0x31f   :  { %1046 = vrcp.f32 %v314_v1  ;;  %v326_v15 = vand.u32 2147483648, %v314_v1  ;;  %vm320_vm1 = vweird.f32 %v314_v1  ;;  %v324_v17 = vand.u32 2147483647, %v314_v1 }
 0x321   :  { %v327_v22 = vor.u32 1.1754944e-38, %v326_v15  ;;  %vm325_vm3 = vcmp.eq.f32.partialorder %v324_v17, 8.507059e+37 }
 0x323   :  { %351 = vperm.xlu2 %1029, %v349_v7  }
 0x325   :  { %v1047_v8 = vpop.eup %1046 }
 0x326   :  { %v316_v9 = vmul.f32 %v1047_v8, %v314_v1  ;;  %vm321_vm15 = vweird.f32 %v1047_v8 }
 0x327   :  { %vm322_vm2 = vmor %vm320_vm1, %vm321_vm15 }
 0x328   :  { %v317_v12 = vsub.f32 1.0, %v316_v9 }
 0x32a   :  { %v318_v5 = vmul.f32 %v1047_v8, %v317_v12  ;;  %v604_v12 = vsel %vm603_vm12, 1, %v1208_v19 }
 0x32c   :  { %v319_v14 = vadd.f32 %v1047_v8, %v318_v5 }
 0x32e   :  { %v323_v20 = vsel %vm322_vm2, %v1047_v8, %v319_v14  ;;  %v519_v8 = vsel %vm518_vm11, 1, %v1208_v19 }
 0x32f   :  { %v328_v2 = vsel %vm325_vm3, %v327_v22, %v323_v20 }
 0x330   :  { %v331_v23 = vmul.f32 %v328_v2, %v270_v6 }
 0x375   :  { %v334_v16 = vpop.permute.xlu2 %333 }
 0x376   :  { %v336_v3 = vmul.f32 %v334_v16, %v328_v2 }
 0x378   :  { %338 = vrot.lane.b32.xlu0 %v336_v3, %s1207_s21 }
 0x37d   :  { %v352_v26 = vpop.permute.xlu2 %351 }
 0x37e   :  { %vm353_vm4 = vcmp.eq.s32.totalorder %v352_v26, 1 }
 0x3ea   :  { %v339_v24 = vpop.permute.xlu0 %338 }
 0x3eb   :  { %v341_v25 = vadd.f32 %v339_v24, %v331_v23 }
 0x3ed   :  { %1048 = vtanh.f32 %v341_v25  ;;  %v355_v48 = vsel %vm353_vm4, %v341_v25, %v270_v6 }
 0x3f3   :  { %v1049_v21 = vpop.eup %1048 }
 0x3f4   :  { %344 = vrot.lane.b32.xlu1 %v1049_v21, %s1206_s5 }
 0x466   :  { %v345_v4 = vpop.permute.xlu1 %344 }
 0x467   :  { %v347_v28 = vmul.f32 %v345_v4, %v328_v2 }
 0x469   :  { %v354_v31 = vsel %vm353_vm4, %v347_v28, %v269_v56 }
 0x46a   :  { %357 = vrot.lane.b32.xlu0 %v354_v31, %s1207_s21 }
 0x4dc   :  { %v358_v10 = vpop.permute.xlu0 %357 }
 0x4dd   :  { %994 = vmatmul.msk.f32.vlgmr.msrb.gmra.mxu3 %vm102_vm0, %v358_v10 }
 0x560   :  { %v393_v32 = vpop.f32.mrf.mxu3 }
 0x561   :  { %v394_v34 = vadd.f32 %v393_v32, %v1437_v63 }
 0x563   :  { %1050 = vtanh.f32 %v394_v34  ;;  %v995_v36 = vmul.f32 -1.442695, %v394_v34 }
 0x565   :  { %1052 = vpow2.f32 %v995_v36 }
 0x569   :  { %v1051_v35 = vpop.eup %1050 }
 0x56a   :  { %418 = vrot.lane.b32.xlu1 %v1051_v35, %s1206_s5 }
 0x56b   :  { %v1053_v46 = vpop.eup %1052 }
 0x56c   :  { %v399_v11 = vadd.f32 1.0, %v1053_v46 }
 0x56e   :  { %1054 = vrcp.f32 %v399_v11  ;;  %v411_v63 = vand.u32 2147483648, %v399_v11  ;;  %vm405_vm7 = vweird.f32 %v399_v11  ;;  %v409_v13 = vand.u32 2147483647, %v399_v11 }
 0x570   :  { %v412_v43 = vor.u32 1.1754944e-38, %v411_v63  ;;  %vm410_vm9 = vcmp.eq.f32.partialorder %v409_v13, 8.507059e+37 }
 0x572   :  { %436 = vperm.xlu1 %1028, %v434_v54  }
 0x574   :  { %v1055_v37 = vpop.eup %1054 }
 0x575   :  { %v401_v38 = vmul.f32 %v1055_v37, %v399_v11  ;;  %vm406_vm6 = vweird.f32 %v1055_v37 }
 0x576   :  { %vm407_vm8 = vmor %vm405_vm7, %vm406_vm6 }
 0x577   :  { %v402_v39 = vsub.f32 1.0, %v401_v38 }
 0x579   :  { %v403_v40 = vmul.f32 %v1055_v37, %v402_v39 }
 0x57b   :  { %v404_v41 = vadd.f32 %v1055_v37, %v403_v40 }
 0x57d   :  { %v408_v42 = vsel %vm407_vm8, %v1055_v37, %v404_v41  ;;  %vm688_vm8 = vcmp.gt.s32.totalorder %v1483_v51, 5 }
 0x57e   :  { %v413_v45 = vsel %vm410_vm9, %v412_v43, %v408_v42 }
 0x57f   :  { %v416_v49 = vmul.f32 %v413_v45, %v355_v48 }
 0x5dc   :  { %v419_v44 = vpop.permute.xlu1 %418 }
 0x5dd   :  { %v421_v47 = vmul.f32 %v419_v44, %v413_v45 }
 0x5df   :  { %423 = vrot.lane.b32.xlu2 %v421_v47, %s1207_s21 }
 0x5e4   :  { %v437_v53 = vpop.permute.xlu1 %436 }
 0x5e5   :  { %vm438_vm10 = vcmp.eq.s32.totalorder %v437_v53, 1 }
 0x639   :  { %v424_v50 = vpop.permute.xlu2 %423 }
 0x63a   :  { %v426_v18 = vadd.f32 %v424_v50, %v416_v49 }
 0x63c   :  { %1056 = vtanh.f32 %v426_v18  ;;  %v440_v23 = vsel %vm438_vm10, %v426_v18, %v355_v48 }
 0x642   :  { %v1057_v52 = vpop.eup %1056 }
 0x643   :  { %429 = vrot.lane.b32.xlu0 %v1057_v52, %s1206_s5 }
 0x6b5   :  { %v430_v55 = vpop.permute.xlu0 %429 }
 0x6b6   :  { %v432_v56 = vmul.f32 %v430_v55, %v413_v45 }
 0x6b8   :  { %v439_v57 = vsel %vm438_vm10, %v432_v56, %v354_v31 }
 0x6b9   :  { %442 = vrot.lane.b32.xlu2 %v439_v57, %s1207_s21 }
 0x713   :  { %v443_v58 = vpop.permute.xlu2 %442 }
 0x714   :  { %996 = vmatmul.msk.f32.vlgmr.msra.gmra.mxu1 %vm102_vm0, %v443_v58 }
 0x791   :  { %v478_v59 = vpop.f32.mrf.mxu1 }
 0x792   :  { %v479_v60 = vadd.f32 %v478_v59, %v1440_v0 }
 0x794   :  { %1058 = vtanh.f32 %v479_v60  ;;  %v997_v62 = vmul.f32 -1.442695, %v479_v60 }
 0x796   :  { %1060 = vpow2.f32 %v997_v62 }
 0x79a   :  { %v1059_v61 = vpop.eup %1058 }
 0x79b   :  { %503 = vrot.lane.b32.xlu0 %v1059_v61, %s1206_s5  ;;  %v689_v61 = vsel %vm688_vm8, 1, %v1208_v19 }
 0x79c   :  { %v1061_v1 = vpop.eup %1060 }
 0x79d   :  { %v484_v7 = vadd.f32 1.0, %v1061_v1 }
 0x79f   :  { %1062 = vrcp.f32 %v484_v7  ;;  %v496_v17 = vand.u32 2147483648, %v484_v7  ;;  %vm490_vm14 = vweird.f32 %v484_v7  ;;  %v494_v20 = vand.u32 2147483647, %v484_v7 }
 0x7a1   :  { %v497_v16 = vor.u32 1.1754944e-38, %v496_v17  ;;  %vm495_vm1 = vcmp.eq.f32.partialorder %v494_v20, 8.507059e+37 }
 0x7a3   :  { %521 = vperm.xlu0 %1030, %v519_v8  }
 0x7a5   :  { %v1063_v9 = vpop.eup %1062 }
 0x7a6   :  { %v486_v0 = vmul.f32 %v1063_v9, %v484_v7  ;;  %vm491_vm13 = vweird.f32 %v1063_v9 }
 0x7a7   :  { %vm492_vm15 = vmor %vm490_vm14, %vm491_vm13  ;;  %vm773_vm14 = vcmp.gt.s32.totalorder %v1483_v51, 6 }
 0x7a8   :  { %v487_v5 = vsub.f32 1.0, %v486_v0 }
 0x7aa   :  { %v488_v14 = vmul.f32 %v1063_v9, %v487_v5 }
 0x7ab   :  { %606 = vperm.xlu0 %1030, %v604_v12  }
 0x7ac   :  { %v489_v15 = vadd.f32 %v1063_v9, %v488_v14 }
 0x7ae   :  { %v493_v22 = vsel %vm492_vm15, %v1063_v9, %v489_v15 }
 0x7af   :  { %v498_v3 = vsel %vm495_vm1, %v497_v16, %v493_v22 }
 0x7b0   :  { %v501_v24 = vmul.f32 %v498_v3, %v440_v23 }
 0x80d   :  { %v504_v2 = vpop.permute.xlu0 %503 }
 0x80e   :  { %v506_v6 = vmul.f32 %v504_v2, %v498_v3 }
 0x810   :  { %508 = vrot.lane.b32.xlu1 %v506_v6, %s1207_s21 }
 0x815   :  { %v522_v4 = vpop.permute.xlu0 %521 }
 0x816   :  { %vm523_vm2 = vcmp.eq.s32.totalorder %v522_v4, 1 }
 0x81d   :  { %v607_v52 = vpop.permute.xlu0 %606 }
 0x81e   :  { %vm608_vm7 = vcmp.eq.s32.totalorder %v607_v52, 1 }
 0x882   :  { %v509_v25 = vpop.permute.xlu1 %508 }
 0x883   :  { %v511_v21 = vadd.f32 %v509_v25, %v501_v24 }
 0x885   :  { %1064 = vtanh.f32 %v511_v21  ;;  %v525_v47 = vsel %vm523_vm2, %v511_v21, %v440_v23 }
 0x88b   :  { %v1065_v26 = vpop.eup %1064 }
 0x88c   :  { %514 = vrot.lane.b32.xlu2 %v1065_v26, %s1206_s5 }
 0x8e6   :  { %v515_v28 = vpop.permute.xlu2 %514 }
 0x8e7   :  { %v517_v31 = vmul.f32 %v515_v28, %v498_v3 }
 0x8e9   :  { %v524_v10 = vsel %vm523_vm2, %v517_v31, %v439_v57 }
 0x8ea   :  { %527 = vrot.lane.b32.xlu1 %v524_v10, %s1207_s21 }
 0x95c   :  { %v528_v32 = vpop.permute.xlu1 %527 }
 0x95d   :  { %998 = vmatmul.msk.f32.vlgmr.msrb.gmra.mxu2 %vm102_vm0, %v528_v32 }
 0x9e0   :  { %v563_v34 = vpop.f32.mrf.mxu2 }
 0x9e1   :  { %v564_v35 = vadd.f32 %v563_v34, %v1455_v27  ;;  %v774_v34 = vsel %vm773_vm14, 1, %v1208_v19 }
 0x9e3   :  { %1066 = vtanh.f32 %v564_v35  ;;  %v999_v36 = vmul.f32 -1.442695, %v564_v35 }
 0x9e5   :  { %1068 = vpow2.f32 %v999_v36 }
 0x9e9   :  { %v1067_v54 = vpop.eup %1066 }
 0x9ea   :  { %588 = vrot.lane.b32.xlu2 %v1067_v54, %s1206_s5 }
 0x9eb   :  { %v1069_v46 = vpop.eup %1068 }
 0x9ec   :  { %v569_v11 = vadd.f32 1.0, %v1069_v46 }
 0x9ee   :  { %1070 = vrcp.f32 %v569_v11  ;;  %v581_v63 = vand.u32 2147483648, %v569_v11  ;;  %vm575_vm4 = vweird.f32 %v569_v11  ;;  %v579_v13 = vand.u32 2147483647, %v569_v11 }
 0x9f0   :  { %v582_v42 = vor.u32 1.1754944e-38, %v581_v63  ;;  %vm580_vm6 = vcmp.eq.f32.partialorder %v579_v13, 8.507059e+37 }
 0x9f4   :  { %v1071_v37 = vpop.eup %1070 }
 0x9f5   :  { %v571_v38 = vmul.f32 %v1071_v37, %v569_v11  ;;  %vm576_vm3 = vweird.f32 %v1071_v37 }
 0x9f6   :  { %vm577_vm5 = vmor %vm575_vm4, %vm576_vm3 }
 0x9f7   :  { %v572_v39 = vsub.f32 1.0, %v571_v38 }
 0x9f9   :  { %v573_v40 = vmul.f32 %v1071_v37, %v572_v39 }
 0x9fb   :  { %v574_v41 = vadd.f32 %v1071_v37, %v573_v40 }
 0x9fd   :  { %v578_v27 = vsel %vm577_vm5, %v1071_v37, %v574_v41  ;;  %vm858_vm5 = vcmp.gt.s32.totalorder %v1483_v51, 7 }
 0x9fe   :  { %v583_v44 = vsel %vm580_vm6, %v582_v42, %v578_v27 }
 0x9ff   :  { %v586_v48 = vmul.f32 %v583_v44, %v525_v47 }
 0xa44   :  { %v589_v43 = vpop.permute.xlu2 %588 }
 0xa45   :  { %v591_v45 = vmul.f32 %v589_v43, %v583_v44 }
 0xa47   :  { %593 = vrot.lane.b32.xlu1 %v591_v45, %s1207_s21 }
 0xab9   :  { %v594_v49 = vpop.permute.xlu1 %593 }
 0xaba   :  { %v596_v50 = vadd.f32 %v594_v49, %v586_v48 }
 0xabc   :  { %1072 = vtanh.f32 %v596_v50  ;;  %v610_v2 = vsel %vm608_vm7, %v596_v50, %v525_v47 }
 0xac2   :  { %v1073_v18 = vpop.eup %1072 }
 0xac3   :  { %599 = vrot.lane.b32.xlu2 %v1073_v18, %s1206_s5 }
 0xb1d   :  { %v600_v53 = vpop.permute.xlu2 %599 }
 0xb1e   :  { %v602_v55 = vmul.f32 %v600_v53, %v583_v44 }
 0xb20   :  { %v609_v56 = vsel %vm608_vm7, %v602_v55, %v524_v10 }
 0xb21   :  { %612 = vrot.lane.b32.xlu1 %v609_v56, %s1207_s21 }
 0xb93   :  { %v613_v57 = vpop.permute.xlu1 %612 }
 0xb94   :  { %1000 = vmatmul.msk.f32.vlgmr.msra.gmra.mxu3 %vm102_vm0, %v613_v57 }
 0xc17   :  { %v648_v58 = vpop.f32.mrf.mxu3 }
 0xc18   :  { %v649_v59 = vadd.f32 %v648_v58, %v1460_v29  ;;  %v859_v58 = vsel %vm858_vm5, 1, %v1208_v19 }
 0xc1a   :  { %1074 = vtanh.f32 %v649_v59  ;;  %v1001_v62 = vmul.f32 -1.442695, %v649_v59 }
 0xc1c   :  { %1076 = vpow2.f32 %v1001_v62 }
 0xc20   :  { %v1075_v60 = vpop.eup %1074 }
 0xc21   :  { %673 = vrot.lane.b32.xlu2 %v1075_v60, %s1206_s5 }
 0xc22   :  { %v1077_v1 = vpop.eup %1076 }
 0xc23   :  { %v654_v7 = vadd.f32 1.0, %v1077_v1 }
 0xc25   :  { %1078 = vrcp.f32 %v654_v7  ;;  %v666_v29 = vand.u32 2147483648, %v654_v7  ;;  %vm660_vm10 = vweird.f32 %v654_v7  ;;  %v664_v14 = vand.u32 2147483647, %v654_v7 }
 0xc27   :  { %v667_v17 = vor.u32 1.1754944e-38, %v666_v29  ;;  %vm665_vm12 = vcmp.eq.f32.partialorder %v664_v14, 8.507059e+37 }
 0xc29   :  { %691 = vperm.xlu2 %1029, %v689_v61  }
 0xc2b   :  { %v1079_v8 = vpop.eup %1078 }
 0xc2c   :  { %v656_v9 = vmul.f32 %v1079_v8, %v654_v7  ;;  %vm661_vm9 = vweird.f32 %v1079_v8 }
 0xc2d   :  { %vm662_vm11 = vmor %vm660_vm10, %vm661_vm9  ;;  %vm871_vm10 = vcmask 64512  }
 0xc2e   :  { %v657_v12 = vsub.f32 1.0, %v656_v9 }
 0xc30   :  { %v658_v0 = vmul.f32 %v1079_v8, %v657_v12 }
 0xc32   :  { %v659_v5 = vadd.f32 %v1079_v8, %v658_v0 }
 0xc34   :  { %v663_v15 = vsel %vm662_vm11, %v1079_v8, %v659_v5 }
 0xc35   :  { %v668_v22 = vsel %vm665_vm12, %v667_v17, %v663_v15  ;;  %vm961_vm12 = vcmask 130048  }
 0xc36   :  { %v671_v3 = vmul.f32 %v668_v22, %v610_v2 }
 0xc7b   :  { %v674_v20 = vpop.permute.xlu2 %673 }
 0xc7c   :  { %v676_v16 = vmul.f32 %v674_v20, %v668_v22 }
 0xc7e   :  { %678 = vrot.lane.b32.xlu0 %v676_v16, %s1207_s21  ;;  %v870_v16 = vld [vmem:[%s1599_s7] sm:$0xff] }
 0xc7f   :  { %890 = vmatpush.msrb.mxu3 %v870_v16 }
 0xc83   :  { %v692_v25 = vpop.permute.xlu2 %691 }
 0xc84   :  { %vm693_vm13 = vcmp.eq.s32.totalorder %v692_v25, 1 }
 0xcf0   :  { %v679_v6 = vpop.permute.xlu0 %678 }
 0xcf1   :  { %v681_v23 = vadd.f32 %v679_v6, %v671_v3  ;;  %v865_v3 = vld [vmem:[%s1594_s2] sm:$0xff]  ;;  %v868_v6 = vld [vmem:[#allocation7 + $0x10] sm:$0xff]  ;;  %s1209_s2 = smov 16  }
 0xcf2   :  { %1006 = vmatmul.msk.f32.vlgmr.msrb.gmra.mxu3 %vm871_vm10, %v865_v3 }
 0xcf3   :  { %1080 = vtanh.f32 %v681_v23  ;;  %v695_v43 = vsel %vm693_vm13, %v681_v23, %v610_v2  ;;  %v869_v2 = vld [vmem:[#allocation7 + $0x18] sm:$0xff]  ;;  %v867_v23 = vld [vmem:[#allocation7 + $0x8] sm:$0xff] }
 0xcf4   :  { %912 = vmatpush.msra.mxu1 %v869_v2 }
 0xcf6   :  { %913 = vmatpush.msra.mxu1 %v868_v6 }
 0xcf8   :  { %914 = vmatpush.msra.mxu1 %v867_v23 }
 0xcf9   :  { %v1081_v24 = vpop.eup %1080 }
 0xcfa   :  { %684 = vrot.lane.b32.xlu1 %v1081_v24, %s1206_s5  ;;  %v866_v24 = vld [vmem:[#allocation7] sm:$0xff] }
 0xcfb   :  { %915 = vmatpush.msra.mxu1 %v866_v24 }
 0xd6c   :  { %v685_v21 = vpop.permute.xlu1 %684 }
 0xd6d   :  { %v687_v26 = vmul.f32 %v685_v21, %v668_v22 }
 0xd6f   :  { %v694_v4 = vsel %vm693_vm13, %v687_v26, %v609_v56  ;;  %vm963_vm13 = vcmask 195584  }
 0xd70   :  { %697 = vrot.lane.b32.xlu0 %v694_v4, %s1207_s21 }
 0xde2   :  { %v698_v28 = vpop.permute.xlu0 %697 }
 0xde3   :  { %1002 = vmatmul.msk.f32.vlgmr.msrb.gmra.mxu1 %vm102_vm0, %v698_v28  ;;  %v929_v28 = vld [vmem:[%s1601_s9 + $0x18] sm:$0xff] }
 0xde4   :  { %949 = vmatpush.msrb.mxu2 %v929_v28 }
 0xe60   :  { %v733_v31 = vpop.f32.mrf.mxu1 }
 0xe61   :  { %v734_v10 = vadd.f32 %v733_v31, %v1468_v30 }
 0xe63   :  { %1082 = vtanh.f32 %v734_v10  ;;  %v1003_v35 = vmul.f32 -1.442695, %v734_v10  ;;  %v928_v10 = vld [vmem:[%s1601_s9 + $0x10] sm:$0xff] }
 0xe64   :  { %950 = vmatpush.msrb.mxu2 %v928_v10 }
 0xe65   :  { %1084 = vpow2.f32 %v1003_v35  ;;  %v892_v35 = vpop.f32.mrf.mxu3 }
 0xe69   :  { %v1083_v32 = vpop.eup %1082 }
 0xe6a   :  { %758 = vrot.lane.b32.xlu1 %v1083_v32, %s1206_s5  ;;  %v927_v32 = vld [vmem:[%s1601_s9 + $0x8] sm:$0xff] }
 0xe6b   :  { %v1085_v54 = vpop.eup %1084  ;;  %951 = vmatpush.msrb.mxu2 %v927_v32 }
 0xe6c   :  { %v739_v36 = vadd.f32 1.0, %v1085_v54  ;;  %v1032_v54 = vld [vmem:[%s1600_s8] ss:$0 sm:$0xff] }
 0xe6e   :  { %1086 = vrcp.f32 %v739_v36  ;;  %v751_v30 = vand.u32 2147483648, %v739_v36  ;;  %vm745_vm1 = vweird.f32 %v739_v36  ;;  %v749_v40 = vand.u32 2147483647, %v739_v36 }
 0xe70   :  { %v752_v63 = vor.u32 1.1754944e-38, %v751_v30  ;;  %vm750_vm3 = vcmp.eq.f32.partialorder %v749_v40, 8.507059e+37 }
 0xe72   :  { %776 = vperm.xlu1 %1028, %v774_v34   ;;  %v926_v34 = vld [vmem:[%s1601_s9] sm:$0xff]  ;;  %s1210_s9 = smov [#allocation8]  }
 0xe73   :  { %952 = vmatpush.msrb.mxu2 %v926_v34  ;;  %s970_s6 = sshll.u32 %s1210_s9, 4  ;;  %s971_s6 = int_to_ptr.vmem [resolvable:$true] %s970_s6 }
 0xe74   :  { %v1087_v46 = vpop.eup %1086 }
 0xe75   :  { %v741_v11 = vmul.f32 %v1087_v46, %v739_v36  ;;  %vm746_vm15 = vweird.f32 %v1087_v46 }
 0xe76   :  { %vm747_vm2 = vmor %vm745_vm1, %vm746_vm15 }
 0xe77   :  { %v742_v37 = vsub.f32 1.0, %v741_v11 }
 0xe79   :  { %v743_v38 = vmul.f32 %v1087_v46, %v742_v37 }
 0xe7b   :  { %v744_v39 = vadd.f32 %v1087_v46, %v743_v38  ;;  %v1033_v38 = vld [vmem:[%s1602_s10] ss:$0 sm:$0xff] }
 0xe7d   :  { %v748_v41 = vsel %vm747_vm2, %v1087_v46, %v744_v39 }
 0xe7e   :  { %v753_v27 = vsel %vm750_vm3, %v752_v63, %v748_v41 }
 0xe7f   :  { %v756_v44 = vmul.f32 %v753_v27, %v695_v43 }
 0xedc   :  { %v759_v13 = vpop.permute.xlu1 %758 }
 0xedd   :  { %v761_v42 = vmul.f32 %v759_v13, %v753_v27 }
 0xedf   :  { %763 = vrot.lane.b32.xlu2 %v761_v42, %s1207_s21 }
 0xee4   :  { %v777_v49 = vpop.permute.xlu1 %776 }
 0xee5   :  { %vm778_vm4 = vcmp.eq.s32.totalorder %v777_v49, 1 }
 0xf39   :  { %v764_v45 = vpop.permute.xlu2 %763 }
 0xf3a   :  { %v766_v47 = vadd.f32 %v764_v45, %v756_v44 }
 0xf3c   :  { %1088 = vtanh.f32 %v766_v47  ;;  %v780_v14 = vsel %vm778_vm4, %v766_v47, %v695_v43 }
 0xf42   :  { %v1089_v48 = vpop.eup %1088 }
 0xf43   :  { %769 = vrot.lane.b32.xlu0 %v1089_v48, %s1206_s5 }
 0xfb5   :  { %v770_v50 = vpop.permute.xlu0 %769 }
 0xfb6   :  { %v772_v18 = vmul.f32 %v770_v50, %v753_v27 }
 0xfb8   :  { %v779_v52 = vsel %vm778_vm4, %v772_v18, %v694_v4 }
 0xfb9   :  { %782 = vrot.lane.b32.xlu2 %v779_v52, %s1207_s21 }
0x1013   :  { %v783_v53 = vpop.permute.xlu2 %782 }
0x1014   :  { %1004 = vmatmul.msk.f32.vlgmr.msra.gmra.mxu2 %vm102_vm0, %v783_v53 }
0x1097   :  { %v818_v55 = vpop.f32.mrf.mxu2 }
0x1098   :  { %v819_v56 = vadd.f32 %v818_v55, %v1473_v33 }
0x109a   :  { %1090 = vtanh.f32 %v819_v56  ;;  %v1005_v59 = vmul.f32 -1.442695, %v819_v56 }
0x109c   :  { %1092 = vpow2.f32 %v1005_v59 }
0x10a0   :  { %v1091_v57 = vpop.eup %1090 }
0x10a1   :  { %843 = vrot.lane.b32.xlu0 %v1091_v57, %s1206_s5 }
0x10a2   :  { %v1093_v60 = vpop.eup %1092 }
0x10a3   :  { %v824_v61 = vadd.f32 1.0, %v1093_v60 }
0x10a5   :  { %1094 = vrcp.f32 %v824_v61  ;;  %v836_v33 = vand.u32 2147483648, %v824_v61  ;;  %vm830_vm7 = vweird.f32 %v824_v61  ;;  %v834_v12 = vand.u32 2147483647, %v824_v61 }
0x10a7   :  { %v837_v51 = vor.u32 1.1754944e-38, %v836_v33  ;;  %vm835_vm9 = vcmp.eq.f32.partialorder %v834_v12, 8.507059e+37 }
0x10a9   :  { %861 = vperm.xlu0 %1030, %v859_v58  }
0x10ab   :  { %v1095_v62 = vpop.eup %1094 }
0x10ac   :  { %v826_v1 = vmul.f32 %v1095_v62, %v824_v61  ;;  %vm831_vm6 = vweird.f32 %v1095_v62 }
0x10ad   :  { %vm832_vm8 = vmor %vm830_vm7, %vm831_vm6 }
0x10ae   :  { %v827_v7 = vsub.f32 1.0, %v826_v1 }
0x10b0   :  { %v828_v8 = vmul.f32 %v1095_v62, %v827_v7 }
0x10b2   :  { %v829_v9 = vadd.f32 %v1095_v62, %v828_v8 }
0x10b4   :  { %v833_v0 = vsel %vm832_vm8, %v1095_v62, %v829_v9 }
0x10b5   :  { %v838_v5 = vsel %vm835_vm9, %v837_v51, %v833_v0 }
0x10b6   :  { %v841_v15 = vmul.f32 %v838_v5, %v780_v14 }
0x1113   :  { %v844_v19 = vpop.permute.xlu0 %843 }
0x1114   :  { %v846_v29 = vmul.f32 %v844_v19, %v838_v5 }
0x1116   :  { %848 = vrot.lane.b32.xlu1 %v846_v29, %s1207_s21 }
0x111b   :  { %v862_v25 = vpop.permute.xlu0 %861 }
0x111c   :  { %vm863_vm11 = vcmp.eq.s32.totalorder %v862_v25, 1 }
0x1188   :  { %v849_v17 = vpop.permute.xlu1 %848 }
0x1189   :  { %v851_v20 = vadd.f32 %v849_v17, %v841_v15 }
0x118b   :  { %1096 = vtanh.f32 %v851_v20 }
0x1191   :  { %v1097_v22 = vpop.eup %1096 }
0x1192   :  { %854 = vrot.lane.b32.xlu2 %v1097_v22, %s1206_s5 }
0x119a   :  { %958 = vrot.lane.b32.xlu2 %v865_v3, %s1209_s2 }
0x11ec   :  { %v855_v21 = vpop.permute.xlu2 %854 }
0x11ed   :  { %v857_v26 = vmul.f32 %v855_v21, %v838_v5 }
0x11ef   :  { %v864_v4 = vsel %vm863_vm11, %v857_v26, %v779_v52 }
0x11f0   :  { %896 = vrot.lane.b32.xlu1 %v864_v4, %s1207_s21 }
0x11f4   :  { %v959_v40 = vpop.permute.xlu2 %958 }
0x1262   :  { %v897_v31 = vpop.permute.xlu1 %896 }
0x1263   :  { %1007 = vmatmul.msk.f32.vlgmr.msra.gmra.mxu1 %vm102_vm0, %v897_v31 }
0x12e0   :  { %v917_v36 = vpop.f32.mrf.mxu1 }
0x12e1   :  { %v918_v46 = vadd.f32 %v917_v36, %v892_v35 }
0x12e3   :  { %v924_v11 = vadd.f32 %v1032_v54, %v918_v46 }
0x12e5   :  { %v925_v37 = vmax.f32 %v924_v11, 0.0 }
0x12e7   :  { %1008 = vmatmul.msk.f32.vlgmr.msrb.gmra.mxu2 %vm102_vm0, %v925_v37 }
0x136a   :  { %v954_v39 = vpop.f32.mrf.mxu2 }
0x136b   :  { %v955_v30 = vadd.f32 %v1033_v38, %v954_v39 }
0x136d   :  { %v957_v41 = vmax.f32 %v955_v30, 0.0 }
0x136f   :  { %v962_v63 = vsel %vm961_vm12, %v957_v41, %v959_v40 }
0x1370   :  { %964 = vst.msk [vmem:[#allocation8] sm:$0xff] %vm963_vm13, %v962_v63 }
0x1371   :  { %975 = dma.vmem_to_hbm [thread:$0]  %s971_s6, 128, %s973_s19, [#allocation4]  }
0x1372   :  { %1198 = dma.done.wait [#allocation4], 128  }
0x1373   :  { %1199 = vsyncadd [#allocation4], 4294967168 }
0x1374   :  { %980 = vsyncpa [#allocation3], 1 }
0x1375   :  { %981 = vsyncpa [#allocation6], 1 }
0x1376   :  { %982 = vsyncpa [#allocation4], 1 }

</bundles_post_ra>
